<compile_context>
chip_gen: v7x
topology: tpu7x:2x2x1
jax: 0.10.0
libtpu: 0.0.40
codegen_flags: <defaults>
</compile_context>

<pallas_src>
import math

import jax
import jax.numpy as jnp
from jax.experimental import pallas as pl
from jax.experimental.pallas import tpu as pltpu

NUM_HEADS = 5  # fixed inside the PyTorch module


def _round_up(x, m):
    return ((x + m - 1) // m) * m


def fused_attn_kernel(x_ref, w_ref, b_ref, o_ref):
    """seq_len == 1 MultiheadAttention, fully fused.

    x_ref : (TM, E)  input row-tile (unpadded, E is the full last dim)
    w_ref : (E,  E)  fused weight  W_v^T @ W_o^T  (in_dim, out_dim), VMEM-resident
    b_ref : (1,  E)  fused bias    b_v @ W_o^T + b_o
    o_ref : (TM, E)  output row-tile
    """
    o_ref[...] = (
        jnp.dot(x_ref[...], w_ref[...], preferred_element_type=jnp.float32)
        + b_ref[...]
    ).astype(o_ref.dtype)


def transformer_forward(x, in_proj_weight, in_proj_bias, out_proj_weight,
                        out_proj_bias, *, use_bf16=False):
    """JAX wrapper: fuses V-proj + out-proj, tiles rows, no pad/slice passes."""
    N, E = x.shape
    assert E % NUM_HEADS == 0, "embed_dim must be divisible by num_heads"

    f32 = jnp.float32

    # Only the V slice of the packed in_proj is live for seq_len == 1, and the
    # two linears fuse into one affine map (one-time XLA work in the wrapper):
    #   out = (x @ Wv^T + bv) @ Wo^T + bo = x @ (Wv^T @ Wo^T) + (bv @ Wo^T + bo)
    w_v = in_proj_weight[2 * E: 3 * E, :].astype(f32)          # (E, E)
    b_v = in_proj_bias[2 * E: 3 * E].astype(f32)               # (E,)
    w_o = out_proj_weight.astype(f32)                          # (E, E)
    b_o = out_proj_bias.astype(f32)                            # (E,)

    w_fused = w_v.T @ w_o.T                                    # (E, E) (in, out)
    b_fused = (b_v @ w_o.T + b_o).reshape(1, E).astype(f32)    # (1, E)

    x_in = x.astype(f32)
    if use_bf16:
        # v5e/v6e lever: bf16 MXU inputs with f32 accumulation (error ~1e-2).
        x_in = x_in.astype(jnp.bfloat16)
        w_fused = w_fused.astype(jnp.bfloat16)

    # Row-tile selection:
    #   * tiny N: one sublane-aligned tile covering N
    #   * large N: 256-aligned tile up to 1024, capped so the grid keeps >= 2
    #     steps (the "parallel" axis is what shards across v7x's two TCs).
    if N <= 256:
        TM = _round_up(max(N, 8), 8)
    else:
        TM = min(1024, _round_up(pl.cdiv(N, 2), 256))

    grid = (pl.cdiv(N, TM),)  # ragged last tile: OOB reads/writes are per-row
                              # independent, so edge handling is exact.

    out = pl.pallas_call(
        fused_attn_kernel,
        out_shape=jax.ShapeDtypeStruct((N, E), f32),
        grid_spec=pltpu.PrefetchScalarGridSpec(
            num_scalar_prefetch=0,
            grid=grid,
            in_specs=[
                pl.BlockSpec((TM, E), lambda i: (i, 0)),  # x row tile
                pl.BlockSpec((E, E), lambda i: (0, 0)),   # fused weight (resident)
                pl.BlockSpec((1, E), lambda i: (0, 0)),   # fused bias   (resident)
            ],
            out_specs=pl.BlockSpec((TM, E), lambda i: (i, 0)),
        ),
        compiler_params=pltpu.CompilerParams(
            dimension_semantics=("parallel",),  # row tiles shard across TCs (v7x)
        ),
    )(x_in, w_fused, b_fused)

    return out


def reference_forward(x, in_proj_weight, in_proj_bias, out_proj_weight, out_proj_bias):
    """Plain-JAX reference of nn.MultiheadAttention with seq_len == 1."""
    E = x.shape[1]
    qkv = x @ in_proj_weight.T + in_proj_bias
    v = qkv[:, 2 * E:]
    # softmax over a single key is exactly 1 -> per-head attn output == V.
    return v @ out_proj_weight.T + out_proj_bias


if __name__ == "__main__":
    # Small shapes consistent with the module: embed_dim must be divisible by 5.
    input_shape = 40     # E (embed dim)
    output_shape = 32    # out_features of the unused q/k/v Linears
    N = 8                # number of input rows (becomes the MHA batch, seq_len = 1)

    key = jax.random.PRNGKey(0)
    kx, k_in_w, k_in_b, k_out_w, k_out_b, k_q, k_k, k_v = jax.random.split(key, 8)

    x = jax.random.normal(kx, (N, input_shape), dtype=jnp.float32)

    # nn.MultiheadAttention parameters (deterministic synthetic init).
    bound_in = 1.0 / math.sqrt(input_shape)
    in_proj_weight = jax.random.uniform(
        k_in_w, (3 * input_shape, input_shape), minval=-bound_in, maxval=bound_in
    ).astype(jnp.float32)
    in_proj_bias = jax.random.uniform(
        k_in_b, (3 * input_shape,), minval=-bound_in, maxval=bound_in
    ).astype(jnp.float32)
    out_proj_weight = jax.random.uniform(
        k_out_w, (input_shape, input_shape), minval=-bound_in, maxval=bound_in
    ).astype(jnp.float32)
    out_proj_bias = jax.random.uniform(
        k_out_b, (input_shape,), minval=-bound_in, maxval=bound_in
    ).astype(jnp.float32)

    # Unused-in-forward Linear layers (instantiated for shape fidelity only).
    _wq = jax.random.normal(k_q, (output_shape, input_shape), dtype=jnp.float32)
    _wk = jax.random.normal(k_k, (output_shape, input_shape), dtype=jnp.float32)
    _wv = jax.random.normal(k_v, (output_shape, input_shape), dtype=jnp.float32)

    # --- small-N case (the module's nominal shape) ---
    out = transformer_forward(x, in_proj_weight, in_proj_bias, out_proj_weight, out_proj_bias)
    out = jax.block_until_ready(out)
    ref = reference_forward(x, in_proj_weight, in_proj_bias, out_proj_weight, out_proj_bias)
    assert out.shape == (N, input_shape)
    assert jnp.allclose(out, ref, atol=1e-5, rtol=1e-5), "kernel mismatch vs reference (small N)"

    # --- larger ragged-N case: exercises multi-tile grid + edge-block handling ---
    N2 = 700
    x2 = jax.random.normal(jax.random.PRNGKey(1), (N2, input_shape), dtype=jnp.float32)
    out2 = transformer_forward(x2, in_proj_weight, in_proj_bias, out_proj_weight, out_proj_bias)
    out2 = jax.block_until_ready(out2)
    ref2 = reference_forward(x2, in_proj_weight, in_proj_bias, out_proj_weight, out_proj_bias)
    assert out2.shape == (N2, input_shape)
    assert jnp.allclose(out2, ref2, atol=1e-5, rtol=1e-5), "kernel mismatch vs reference (large N)"

    print("KERNEL_OK")
</pallas_src>

<mosaic_0001>
module attributes {stable_mosaic.version = 11 : i64} {
  func.func @fused_attn_kernel(%arg0: i32, %arg1: memref<8x40xf32, #tpu.memory_space<vmem>>, %arg2: memref<40x40xf32, #tpu.memory_space<vmem>>, %arg3: memref<1x40xf32, #tpu.memory_space<vmem>>, %arg4: memref<8x40xf32, #tpu.memory_space<vmem>>) attributes {dimension_semantics = [#tpu.dimension_semantics<parallel>], iteration_bounds = array<i64: 1>, scalar_prefetch = 0 : i64, scratch_operands = 0 : i64, tpu.core_type = #tpu.core_type<tc>, window_params = [{transform_indices = @transform_0, window_bounds = array<i64: 8, 40>}, {pipeline_mode = #tpu.pipeline_mode<synchronous>, transform_indices = @transform_1, window_bounds = array<i64: 40, 40>}, {pipeline_mode = #tpu.pipeline_mode<synchronous>, transform_indices = @transform_2, window_bounds = array<i64: 1, 40>}, {transform_indices = @transform_3, window_bounds = array<i64: 8, 40>}]} {
    %c0 = arith.constant 0 : index
    %c0_0 = arith.constant 0 : index
    %0 = vector.load %arg1[%c0, %c0_0] : memref<8x40xf32, #tpu.memory_space<vmem>>, vector<8x40xf32>
    %c0_1 = arith.constant 0 : index
    %c0_2 = arith.constant 0 : index
    %1 = vector.load %arg2[%c0_1, %c0_2] : memref<40x40xf32, #tpu.memory_space<vmem>>, vector<40x40xf32>
    %cst = arith.constant dense<0.000000e+00> : vector<8x40xf32>
    %2 = tpu.matmul %0, %1, %cst {dimension_numbers = #tpu.dot_dimension_numbers<[1], [0], [0], [1], [0, 0, 1, 1], [], []>} : vector<8x40xf32>, vector<40x40xf32>, vector<8x40xf32> -> vector<8x40xf32>
    %c0_3 = arith.constant 0 : index
    %c0_4 = arith.constant 0 : index
    %3 = vector.load %arg3[%c0_3, %c0_4] : memref<1x40xf32, #tpu.memory_space<vmem>>, vector<1x40xf32>
    %4 = vector.broadcast %3 : vector<1x40xf32> to vector<8x40xf32>
    %5 = arith.addf %2, %4 : vector<8x40xf32>
    %c0_5 = arith.constant 0 : index
    %c0_6 = arith.constant 0 : index
    %6 = vector.load %arg4[%c0_5, %c0_6] : memref<8x40xf32, #tpu.memory_space<vmem>>, vector<8x40xf32>
    tpu.vector_store %arg4[%c0_5, %c0_6], %5 {strides = array<i32>} : memref<8x40xf32, #tpu.memory_space<vmem>>, vector<8x40xf32>,
    return
  }
  func.func @transform_0(%arg0: i32) -> (i32, i32) {
    %c0_i32 = arith.constant 0 : i32
    %c0_i32_0 = arith.constant 0 : i32
    return %arg0, %c0_i32 : i32, i32
  }
  func.func @transform_1(%arg0: i32) -> (i32, i32) {
    %c0_i32 = arith.constant 0 : i32
    %c0_i32_0 = arith.constant 0 : i32
    %c0_i32_1 = arith.constant 0 : i32
    return %c0_i32, %c0_i32_0 : i32, i32
  }
  func.func @transform_2(%arg0: i32) -> (i32, i32) {
    %c0_i32 = arith.constant 0 : i32
    %c0_i32_0 = arith.constant 0 : i32
    %c0_i32_1 = arith.constant 0 : i32
    return %c0_i32, %c0_i32_0 : i32, i32
  }
  func.func @transform_3(%arg0: i32) -> (i32, i32) {
    %c0_i32 = arith.constant 0 : i32
    %c0_i32_0 = arith.constant 0 : i32
    return %arg0, %c0_i32 : i32, i32
  }
}

</mosaic_0001>

<bundles_post_ra>
// kernel: tpu_custom_call.1
= control target key start
LH: loop header
LB: loop body
LE: loop exit
PB: predicated region body
PF: predicated region fallthrough
CT: control target
= control target key end

     0   :  { %8 = vsyncpa [#allocation3], 0  ;;  %s326_s0 = inlined_call_operand.hbm [shape: f32[8,40], index: 0, kind: input, shape index: {}]   ;;  %s327_s1 = inlined_call_operand.hbm [shape: f32[40,40], index: 1, kind: input, shape index: {}]   ;;  %s328_s2 = inlined_call_operand.vmem [shape: f32[1,40], index: 2, kind: input, shape index: {}]   ;;  %s329_s3 = inlined_call_operand.hbm [shape: f32[8,40], index: 3, kind: output, shape index: {}]  }
   0x1   :  { %9 = vsyncpa [#allocation6], 0 }
   0x2   :  { %10 = vsyncpa [#allocation4], 0  ;;  %s252_s12 = smov [#allocation2]   ;;  %s253_s14 = smov [#allocation5]  }
   0x3   :  { %s17_s13 = sshll.u32 %s252_s12, 4  ;;  %s26_s15 = sshll.u32 %s253_s14, 4  ;;  %s18_s13 = int_to_ptr.vmem [resolvable:$true] %s17_s13  ;;  %s280_s15 = int_to_ptr.vmem [resolvable:$true] %s26_s15 }
   0x4   :  { %s180_s18 = scalar_lea.hbm %s326_s0, 128 }
   0x5   :  { %p181_p0 = scmp.ne.s32.totalorder %s326_s0, %s180_s18  ;;  %p184_p1 = scmp.lt.u32.totalorder %s180_s18, %s326_s0 }
   0x7   :  { %p186_p2 = pnand %p184_p1, %p181_p0 }
   0x9   :  { %189 = shalt.err (!%p186_p2)
}
   0xa   :  { %s190_s23 = scalar_lea.vmem %s18_s13, 128  ;;  %p195_p4 = scmp.lt.s32.totalorder %s18_s13, %s18_s13 }
   0xb   :  { %p191_p3 = scmp.ne.s32.totalorder %s18_s13, %s190_s23  ;;  %p196_p5 = scmp.lt.s32.totalorder %s190_s23, %s190_s23 }
   0xd   :  { %p197_p6 = por %p196_p5, %p195_p4 }
   0xf   :  { %p198_p7 = pnand %p197_p6, %p191_p3 }
  0x11   :  { %201 = shalt.err (!%p198_p7)
}
  0x12   :  { %20 = dma.hbm_to_vmem [thread:$0]  %s326_s0, 128, %s18_s13, [#allocation3]  }
  0x13   :  { %s202_s28 = scalar_lea.hbm %s327_s1, 640 }
  0x14   :  { %p203_p8 = scmp.ne.s32.totalorder %s327_s1, %s202_s28  ;;  %p206_p9 = scmp.lt.u32.totalorder %s202_s28, %s327_s1 }
  0x16   :  { %p208_p10 = pnand %p206_p9, %p203_p8 }
  0x18   :  { %211 = shalt.err (!%p208_p10)
}
  0x19   :  { %s212_s6 = scalar_lea.vmem %s280_s15, 640  ;;  %p217_p12 = scmp.lt.s32.totalorder %s280_s15, %s280_s15 }
  0x1a   :  { %p213_p11 = scmp.ne.s32.totalorder %s280_s15, %s212_s6  ;;  %p218_p13 = scmp.lt.s32.totalorder %s212_s6, %s212_s6 }
  0x1c   :  { %p219_p0 = por %p218_p13, %p217_p12 }
  0x1e   :  { %p220_p1 = pnand %p219_p0, %p213_p11 }
  0x20   :  { %223 = shalt.err (!%p220_p1)
}
  0x21   :  { %s254_s0 = smov 128   ;;  %s255_s7 = smov 8  }
  0x22   :  { %32 = dma.hbm_to_vmem [thread:$0]  %s327_s1, 640, %s280_s15, [#allocation6], %s254_s0, %s254_s0, %s255_s7  }
  0x23   :  { %246 = dma.done.wait [#allocation3], 128  }
  0x24   :  { %247 = vsyncadd [#allocation3], 4294967168 }
  0x25   :  { %248 = dma.done.wait [#allocation6], 640  }
  0x26   :  { %249 = vsyncadd [#allocation6], 4294966656  ;;  %v256_v0 = vmov 0.0|0.0   ;;  %vm257_vm0 = vmmov 0   ;;  %v258_v1 = vmov 0.0   ;;  %v42_v2 = vld [vmem:[#allocation5] sm:$0xff] }
  0x27   :  { %166 = vmatprep.subr.bf16.mxu0 %v256_v0  ;;  %163 = vmatprep.mubr.msk.f32.mxu0 %vm257_vm0, %v258_v1  ;;  %v43_v3 = vld [vmem:[#allocation5 + $0x8] sm:$0xff]  ;;  %v44_v4 = vld [vmem:[#allocation5 + $0x10] sm:$0xff]  ;;  %v45_v6 = vld [vmem:[#allocation5 + $0x18] sm:$0xff]  ;;  %vm54_vm1 = vcmask 326656   ;;  %s259_s11 = smov [#allocation7]  }
  0x28   :  { %v167_v5 = vpack.c.bf16 %v43_v3, %v42_v2  ;;  %v170_v7 = vpack.c.bf16 %v45_v6, %v44_v4  ;;  %v46_v8 = vld [vmem:[#allocation5 + $0x20] sm:$0xff]  ;;  %v41_v9 = vld [vmem:[#allocation2] sm:$0xff]  ;;  %s135_s12 = sshll.u32 %s259_s11, 4  ;;  %s136_s12 = int_to_ptr.vmem [resolvable:$true] %s135_s12 }
  0x29   :  { %v145_v10 = vld [vmem:[%s328_s2] ss:$0 sm:$0xff]  ;;  %s224_s13 = scalar_lea.vmem %s136_s12, 128  ;;  %p229_p3 = scmp.lt.s32.totalorder %s136_s12, %s136_s12 }
  0x2a   :  { %168 = vmatpush3.bf16.msra.mxu0 %v167_v5  ;;  %p225_p2 = scmp.ne.s32.totalorder %s136_s12, %s224_s13  ;;  %p230_p4 = scmp.lt.s32.totalorder %s224_s13, %s224_s13 }
  0x2b   :  { %169 = vmatprep.subr.bf16.mxu0 %v256_v0 }
  0x2c   :  { %p231_p5 = por %p230_p4, %p229_p3 }
  0x2e   :  { %171 = vmatpush3.bf16.msra.mxu0 %v170_v7  ;;  %p232_p6 = pnand %p231_p5, %p225_p2 }
  0x2f   :  { %161 = vmatprep.subr.mxu0 %v258_v1 }
  0x32   :  { %162 = vmatpush3.msra.mxu0 %v46_v8 }
  0x33   :  { %164 = vmatmul.mubr.msk.f32.vlgmr.msra.gmra.mrb[0].mxu0 %vm54_vm1, %v41_v9 }
 0x106   :  { %v124_v11 = vpop.f32.mrb[0].mxu0 }
 0x107   :  { %v125_v12 = vadd.f32 %v145_v10, %v124_v11  ;;  %v165_v13 = vpop.f32.mrb[1].mxu0 }
 0x109   :  { %128 = vst.msk [vmem:[#allocation7] sm:$0xff] %vm54_vm1, %v125_v12 }
 0x10a   :  { %235 = shalt.err (!%p232_p6)
}
 0x10b   :  { %s236_s16 = scalar_lea.hbm %s329_s3, 128 }
 0x10c   :  { %p237_p7 = scmp.ne.s32.totalorder %s329_s3, %s236_s16  ;;  %p240_p8 = scmp.lt.u32.totalorder %s236_s16, %s329_s3 }
 0x10e   :  { %p242_p9 = pnand %p240_p8, %p237_p7 }
 0x110   :  { %245 = shalt.err (!%p242_p9)
}
 0x111   :  { %138 = dma.vmem_to_hbm [thread:$0]  %s136_s12, 128, %s329_s3, [#allocation4]  }
 0x112   :  { %250 = dma.done.wait [#allocation4], 128  }
 0x113   :  { %251 = vsyncadd [#allocation4], 4294967168 }
 0x114   :  { %142 = vsyncpa [#allocation3], 1 }
 0x115   :  { %143 = vsyncpa [#allocation6], 1 }
 0x116   :  { %144 = vsyncpa [#allocation4], 1 }

</bundles_post_ra>
